<compile_context>
chip_gen: v7x
topology: tpu7x:2x2x1
jax: 0.10.0
libtpu: 0.0.40
codegen_flags: <defaults>
</compile_context>

<pallas_src>
import functools

import jax
import jax.numpy as jnp
from jax.experimental import pallas as pl
from jax.experimental.pallas import tpu as pltpu


def _round_up(n, m):
    return ((n + m - 1) // m) * m


def _pick_tile(n, cap):
    """Largest power-of-two tile <= cap that divides n (n is a multiple of 8)."""
    t = cap
    while t > 8 and n % t:
        t //= 2
    return t


# ---------------------------------------------------------------------------
# Kernel 1: time-parallel input projection  pre = x2d @ Wx^T + (bx + bh)
# ---------------------------------------------------------------------------
def _proj_kernel(x_ref, w_ref, b_ref, o_ref):
    o_ref[...] = (
        jnp.dot(x_ref[...], w_ref[...], preferred_element_type=jnp.float32)
        + b_ref[...]
    ).astype(o_ref.dtype)


def _input_projection(x2d, w, b):
    M, I = x2d.shape
    H = w.shape[1]
    tm = _pick_tile(M, 512)
    tn = _pick_tile(H, 512)
    return pl.pallas_call(
        _proj_kernel,
        out_shape=jax.ShapeDtypeStruct((M, H), jnp.float32),
        grid_spec=pltpu.PrefetchScalarGridSpec(
            num_scalar_prefetch=0,
            grid=(M // tm, H // tn),
            in_specs=[
                pl.BlockSpec((tm, I), lambda m, n: (m, 0)),
                pl.BlockSpec((I, tn), lambda m, n: (0, n)),
                pl.BlockSpec((1, tn), lambda m, n: (0, n)),
            ],
            out_specs=pl.BlockSpec((tm, tn), lambda m, n: (m, n)),
        ),
        compiler_params=pltpu.CompilerParams(
            dimension_semantics=("parallel", "parallel"),
            vmem_limit_bytes=32 * 1024 * 1024,
        ),
    )(x2d, w, b)


# ---------------------------------------------------------------------------
# Kernel 2: sequential recurrence over time blocks
#   h_t = tanh(pre_x_t + h_{t-1} @ Wh^T)
# ---------------------------------------------------------------------------
def _recurrent_kernel(px_ref, wh_ref, o_ref, h_ref, *, tt, matmul_dtype):
    # Reset hidden state at the first time block of every batch block.
    @pl.when(pl.program_id(1) == 0)
    def _():
        h_ref[...] = jnp.zeros_like(h_ref)

    wh = wh_ref[...].astype(matmul_dtype)   # loaded once per block
    h = h_ref[...]                          # (TB, H) f32 carry

    # Static unroll over the time block: the only work left on the sequential
    # critical path is one (TB,H)x(H,H) MXU matmul + tanh per timestep; the
    # stores land in the (TB, TT, H) VMEM output block, written back to HBM
    # once per grid step as a lane-dense slab.
    # TODO(synk): for large H, hold Wh in the MXU weight registers via
    # pltpu.matmul_push_rhs / matmul_acc_lhs / matmul_pop to avoid re-pushing
    # the same RHS every timestep.
    for t in range(tt):
        h = jnp.tanh(
            px_ref[:, t, :]
            + jnp.dot(h.astype(matmul_dtype), wh,
                      preferred_element_type=jnp.float32)
        )
        o_ref[:, t, :] = h.astype(o_ref.dtype)

    h_ref[...] = h


def _recurrence(pre_x, wh, out_dtype, *, tt, matmul_dtype):
    Bp, Tp, Hp = pre_x.shape
    tb = _pick_tile(Bp, 128)
    kernel = functools.partial(_recurrent_kernel, tt=tt, matmul_dtype=matmul_dtype)
    return pl.pallas_call(
        kernel,
        out_shape=jax.ShapeDtypeStruct((Bp, Tp, Hp), out_dtype),
        grid_spec=pltpu.PrefetchScalarGridSpec(
            num_scalar_prefetch=0,
            grid=(Bp // tb, Tp // tt),
            in_specs=[
                pl.BlockSpec((tb, tt, Hp), lambda b, t: (b, t, 0)),
                pl.BlockSpec((Hp, Hp), lambda b, t: (0, 0)),
            ],
            out_specs=pl.BlockSpec((tb, tt, Hp), lambda b, t: (b, t, 0)),
            scratch_shapes=[pltpu.VMEM((tb, Hp), jnp.float32)],
        ),
        compiler_params=pltpu.CompilerParams(
            # batch blocks are independent (megacore-parallel on v7x); the time
            # axis carries the hidden state through scratch -> "arbitrary".
            dimension_semantics=("parallel", "arbitrary"),
            vmem_limit_bytes=32 * 1024 * 1024,
        ),
    )(pre_x, wh)


def rnn_forward(x, wx_t, wh_t, bx, bh, *, tt=8, matmul_dtype=jnp.float32):
    """x: (B, T, I); wx_t: (I, H); wh_t: (H, H); bx, bh: (1, H) or (H,).

    matmul_dtype=jnp.bfloat16 trades a little accuracy for MXU throughput on
    v6e/v7x (accumulation and the hidden-state carry stay f32); the default
    f32 path matches the reference to tight tolerance for validation.
    """
    B, T, I = x.shape
    H = wx_t.shape[1]

    Bp = _round_up(B, 8)      # f32 sublane granularity
    Hp = _round_up(H, 128)    # lane granularity -> dense vregs / unmasked vst
    if T <= tt:
        TT, Tp = T, T
    else:
        TT = max(8, (tt // 8) * 8)
        Tp = _round_up(T, TT)

    f32 = jnp.float32
    x_p = jnp.pad(x.astype(f32), ((0, Bp - B), (0, Tp - T), (0, 0)))
    wx_p = jnp.pad(wx_t.astype(f32), ((0, 0), (0, Hp - H)))
    wh_p = jnp.pad(wh_t.astype(f32), ((0, Hp - H), (0, Hp - H)))
    b_p = jnp.pad((bx + bh).astype(f32).reshape(1, H), ((0, 0), (0, Hp - H)))

    # 1) hoisted, time-parallel input projection (one big MXU matmul).
    pre = _input_projection(x_p.reshape(Bp * Tp, I), wx_p, b_p)
    pre_x = pre.reshape(Bp, Tp, Hp)

    # 2) sequential recurrence over time blocks.
    out_p = _recurrence(pre_x, wh_p, x.dtype, tt=TT, matmul_dtype=matmul_dtype)

    return out_p[:B, :T, :H]


def rnn_reference(x, wx_t, wh_t, bx, bh):
    """Pure-JAX reference matching the PyTorch forward."""
    B, T, I = x.shape
    H = wx_t.shape[1]
    bx = bx.reshape(1, H)
    bh = bh.reshape(1, H)

    def step(h, x_t):
        h_new = jnp.tanh(x_t @ wx_t + bx + h @ wh_t + bh)
        return h_new, h_new

    h0 = jnp.zeros((B, H), dtype=jnp.float32)
    _, outs = jax.lax.scan(step, h0, jnp.swapaxes(x, 0, 1))
    return jnp.swapaxes(outs, 0, 1).astype(x.dtype)


def _make_params(key, I, H):
    # PyTorch nn.Linear-style init; W stored (out, in) then pre-transposed.
    k_wx, k_bx, k_wh, k_bh = jax.random.split(key, 4)
    bound_x = 1.0 / jnp.sqrt(jnp.float32(I))
    bound_h = 1.0 / jnp.sqrt(jnp.float32(H))
    wx = jax.random.uniform(k_wx, (H, I), jnp.float32, -bound_x, bound_x)
    bx = jax.random.uniform(k_bx, (1, H), jnp.float32, -bound_x, bound_x)
    wh = jax.random.uniform(k_wh, (H, H), jnp.float32, -bound_h, bound_h)
    bh = jax.random.uniform(k_bh, (1, H), jnp.float32, -bound_h, bound_h)
    return wx.T, wh.T, bx, bh


if __name__ == "__main__":
    key = jax.random.PRNGKey(0)
    k0, k1, k2, k3 = jax.random.split(key, 4)

    fwd = jax.jit(functools.partial(rnn_forward, tt=8))

    # Primary shapes consistent with the module: batch=2, seq=8, in=16, hidden=32.
    B, T, I, H = 2, 8, 16, 32
    wx_t, wh_t, bx, bh = _make_params(k0, I, H)
    x = jax.random.normal(k1, (B, T, I), jnp.float32)

    out = jax.block_until_ready(fwd(x, wx_t, wh_t, bx, bh))
    ref = jax.block_until_ready(rnn_reference(x, wx_t, wh_t, bx, bh))
    assert out.shape == (B, T, H)
    assert jnp.allclose(out, ref, rtol=1e-4, atol=1e-5), "mismatch vs reference (case 1)"

    # Ragged shapes: exercises batch/hidden/time padding and multiple time blocks.
    B2, T2, I2, H2 = 3, 20, 10, 40
    wx2, wh2, bx2, bh2 = _make_params(k2, I2, H2)
    x2 = jax.random.normal(k3, (B2, T2, I2), jnp.float32)

    out2 = jax.block_until_ready(fwd(x2, wx2, wh2, bx2, bh2))
    ref2 = jax.block_until_ready(rnn_reference(x2, wx2, wh2, bx2, bh2))
    assert out2.shape == (B2, T2, H2)
    assert jnp.allclose(out2, ref2, rtol=1e-4, atol=1e-5), "mismatch vs reference (case 2)"

    print("KERNEL_OK")
</pallas_src>

<mosaic_0001>
module attributes {stable_mosaic.version = 11 : i64} {
  func.func @_proj_kernel(%arg0: i32, %arg1: i32, %arg2: memref<64x16xf32, #tpu.memory_space<vmem>>, %arg3: memref<16x128xf32, #tpu.memory_space<vmem>>, %arg4: memref<1x128xf32, #tpu.memory_space<vmem>>, %arg5: memref<64x128xf32, #tpu.memory_space<vmem>>) attributes {dimension_semantics = [#tpu.dimension_semantics<parallel>, #tpu.dimension_semantics<parallel>], iteration_bounds = array<i64: 1, 1>, scalar_prefetch = 0 : i64, scratch_operands = 0 : i64, tpu.core_type = #tpu.core_type<tc>, window_params = [{transform_indices = @transform_0, window_bounds = array<i64: 64, 16>}, {transform_indices = @transform_1, window_bounds = array<i64: 16, 128>}, {transform_indices = @transform_2, window_bounds = array<i64: 1, 128>}, {transform_indices = @transform_3, window_bounds = array<i64: 64, 128>}]} {
    %c0 = arith.constant 0 : index
    %c0_0 = arith.constant 0 : index
    %0 = vector.load %arg2[%c0, %c0_0] : memref<64x16xf32, #tpu.memory_space<vmem>>, vector<64x16xf32>
    %c0_1 = arith.constant 0 : index
    %c0_2 = arith.constant 0 : index
    %1 = vector.load %arg3[%c0_1, %c0_2] : memref<16x128xf32, #tpu.memory_space<vmem>>, vector<16x128xf32>
    %cst = arith.constant dense<0.000000e+00> : vector<64x128xf32>
    %2 = tpu.matmul %0, %1, %cst {dimension_numbers = #tpu.dot_dimension_numbers<[1], [0], [0], [1], [0, 0, 1, 1], [], []>} : vector<64x16xf32>, vector<16x128xf32>, vector<64x128xf32> -> vector<64x128xf32>
    %c0_3 = arith.constant 0 : index
    %c0_4 = arith.constant 0 : index
    %3 = vector.load %arg4[%c0_3, %c0_4] : memref<1x128xf32, #tpu.memory_space<vmem>>, vector<1x128xf32>
    %4 = vector.broadcast %3 : vector<1x128xf32> to vector<64x128xf32>
    %5 = arith.addf %2, %4 : vector<64x128xf32>
    %c0_5 = arith.constant 0 : index
    %c0_6 = arith.constant 0 : index
    %6 = vector.load %arg5[%c0_5, %c0_6] : memref<64x128xf32, #tpu.memory_space<vmem>>, vector<64x128xf32>
    tpu.vector_store %arg5[%c0_5, %c0_6], %5 {strides = array<i32>} : memref<64x128xf32, #tpu.memory_space<vmem>>, vector<64x128xf32>,
    return
  }
  func.func @transform_0(%arg0: i32, %arg1: i32) -> (i32, i32) {
    %c0_i32 = arith.constant 0 : i32
    %c0_i32_0 = arith.constant 0 : i32
    return %arg0, %c0_i32 : i32, i32
  }
  func.func @transform_1(%arg0: i32, %arg1: i32) -> (i32, i32) {
    %c0_i32 = arith.constant 0 : i32
    %c0_i32_0 = arith.constant 0 : i32
    return %c0_i32, %arg1 : i32, i32
  }
  func.func @transform_2(%arg0: i32, %arg1: i32) -> (i32, i32) {
    %c0_i32 = arith.constant 0 : i32
    %c0_i32_0 = arith.constant 0 : i32
    return %c0_i32, %arg1 : i32, i32
  }
  func.func @transform_3(%arg0: i32, %arg1: i32) -> (i32, i32) {
    %c0_i32 = arith.constant 0 : i32
    return %arg0, %arg1 : i32, i32
  }
}

module attributes {stable_mosaic.version = 11 : i64} {
  func.func @_recurrent_kernel(%arg0: i32, %arg1: i32, %arg2: memref<8x8x128xf32, #tpu.memory_space<vmem>>, %arg3: memref<128x128xf32, #tpu.memory_space<vmem>>, %arg4: memref<8x8x128xf32, #tpu.memory_space<vmem>>, %arg5: memref<8x128xf32, #tpu.memory_space<vmem>>) attributes {dimension_semantics = [#tpu.dimension_semantics<parallel>, #tpu.dimension_semantics<arbitrary>], iteration_bounds = array<i64: 1, 1>, scalar_prefetch = 0 : i64, scratch_operands = 1 : i64, tpu.core_type = #tpu.core_type<tc>, window_params = [{transform_indices = @transform_0, window_bounds = array<i64: 8, 8, 128>}, {pipeline_mode = #tpu.pipeline_mode<synchronous>, transform_indices = @transform_1, window_bounds = array<i64: 128, 128>}, {transform_indices = @transform_2, window_bounds = array<i64: 8, 8, 128>}]} {
    %c0_i32 = arith.constant 0 : i32
    %0 = arith.cmpi eq, %arg1, %c0_i32 : i32
    %1 = arith.extui %0 : i1 to i32
    %c0_i32_0 = arith.constant 0 : i32
    %2 = arith.cmpi ne, %1, %c0_i32_0 : i32
    scf.if %2 {
      %cst_54 = arith.constant 0.000000e+00 : f32
      %70 = vector.broadcast %cst_54 : f32 to vector<8x128xf32>
      %c0_55 = arith.constant 0 : index
      %c0_56 = arith.constant 0 : index
      %71 = vector.load %arg5[%c0_55, %c0_56] : memref<8x128xf32, #tpu.memory_space<vmem>>, vector<8x128xf32>
      tpu.vector_store %arg5[%c0_55, %c0_56], %70 {strides = array<i32>} : memref<8x128xf32, #tpu.memory_space<vmem>>, vector<8x128xf32>,
    } else {
    }
    %c0 = arith.constant 0 : index
    %c0_1 = arith.constant 0 : index
    %3 = vector.load %arg3[%c0, %c0_1] : memref<128x128xf32, #tpu.memory_space<vmem>>, vector<128x128xf32>
    %c0_2 = arith.constant 0 : index
    %c0_3 = arith.constant 0 : index
    %4 = vector.load %arg5[%c0_2, %c0_3] : memref<8x128xf32, #tpu.memory_space<vmem>>, vector<8x128xf32>
    %c0_4 = arith.constant 0 : index
    %c0_5 = arith.constant 0 : index
    %c0_6 = arith.constant 0 : index
    %5 = vector.load %arg2[%c0_4, %c0_5, %c0_6] : memref<8x8x128xf32, #tpu.memory_space<vmem>>, vector<8x1x128xf32>
    %6 = vector.shape_cast %5 : vector<8x1x128xf32> to vector<8x128xf32>
    %cst = arith.constant dense<0.000000e+00> : vector<8x128xf32>
    %7 = tpu.matmul %4, %3, %cst {dimension_numbers = #tpu.dot_dimension_numbers<[1], [0], [0], [1], [0, 0, 1, 1], [], []>} : vector<8x128xf32>, vector<128x128xf32>, vector<8x128xf32> -> vector<8x128xf32>
    %8 = arith.addf %6, %7 : vector<8x128xf32>
    %9 = math.tanh %8 : vector<8x128xf32>
    %c0_7 = arith.constant 0 : index
    %c0_8 = arith.constant 0 : index
    %c0_9 = arith.constant 0 : index
    %10 = vector.load %arg4[%c0_7, %c0_8, %c0_9] : memref<8x8x128xf32, #tpu.memory_space<vmem>>, vector<8x1x128xf32>
    %11 = vector.shape_cast %10 : vector<8x1x128xf32> to vector<8x128xf32>
    %12 = vector.shape_cast %9 : vector<8x128xf32> to vector<8x1x128xf32>
    tpu.vector_store %arg4[%c0_7, %c0_8, %c0_9], %12 {strides = array<i32>} : memref<8x8x128xf32, #tpu.memory_space<vmem>>, vector<8x1x128xf32>,
    %c0_10 = arith.constant 0 : index
    %c1 = arith.constant 1 : index
    %c0_11 = arith.constant 0 : index
    %13 = vector.load %arg2[%c0_10, %c1, %c0_11] : memref<8x8x128xf32, #tpu.memory_space<vmem>>, vector<8x1x128xf32>
    %14 = vector.shape_cast %13 : vector<8x1x128xf32> to vector<8x128xf32>
    %cst_12 = arith.constant dense<0.000000e+00> : vector<8x128xf32>
    %15 = tpu.matmul %9, %3, %cst_12 {dimension_numbers = #tpu.dot_dimension_numbers<[1], [0], [0], [1], [0, 0, 1, 1], [], []>} : vector<8x128xf32>, vector<128x128xf32>, vector<8x128xf32> -> vector<8x128xf32>
    %16 = arith.addf %14, %15 : vector<8x128xf32>
    %17 = math.tanh %16 : vector<8x128xf32>
    %c0_13 = arith.constant 0 : index
    %c1_14 = arith.constant 1 : index
    %c0_15 = arith.constant 0 : index
    %18 = vector.load %arg4[%c0_13, %c1_14, %c0_15] : memref<8x8x128xf32, #tpu.memory_space<vmem>>, vector<8x1x128xf32>
    %19 = vector.shape_cast %18 : vector<8x1x128xf32> to vector<8x128xf32>
    %20 = vector.shape_cast %17 : vector<8x128xf32> to vector<8x1x128xf32>
    tpu.vector_store %arg4[%c0_13, %c1_14, %c0_15], %20 {strides = array<i32>} : memref<8x8x128xf32, #tpu.memory_space<vmem>>, vector<8x1x128xf32>,
    %c0_16 = arith.constant 0 : index
    %c2 = arith.constant 2 : index
    %c0_17 = arith.constant 0 : index
    %21 = vector.load %arg2[%c0_16, %c2, %c0_17] : memref<8x8x128xf32, #tpu.memory_space<vmem>>, vector<8x1x128xf32>
    %22 = vector.shape_cast %21 : vector<8x1x128xf32> to vector<8x128xf32>
    %cst_18 = arith.constant dense<0.000000e+00> : vector<8x128xf32>
    %23 = tpu.matmul %17, %3, %cst_18 {dimension_numbers = #tpu.dot_dimension_numbers<[1], [0], [0], [1], [0, 0, 1, 1], [], []>} : vector<8x128xf32>, vector<128x128xf32>, vector<8x128xf32> -> vector<8x128xf32>
    %24 = arith.addf %22, %23 : vector<8x128xf32>
    %25 = math.tanh %24 : vector<8x128xf32>
    %c0_19 = arith.constant 0 : index
    %c2_20 = arith.constant 2 : index
    %c0_21 = arith.constant 0 : index
    %26 = vector.load %arg4[%c0_19, %c2_20, %c0_21] : memref<8x8x128xf32, #tpu.memory_space<vmem>>, vector<8x1x128xf32>
    %27 = vector.shape_cast %26 : vector<8x1x128xf32> to vector<8x128xf32>
    %28 = vector.shape_cast %25 : vector<8x128xf32> to vector<8x1x128xf32>
    tpu.vector_store %arg4[%c0_19, %c2_20, %c0_21], %28 {strides = array<i32>} : memref<8x8x128xf32, #tpu.memory_space<vmem>>, vector<8x1x128xf32>,
    %c0_22 = arith.constant 0 : index
    %c3 = arith.constant 3 : index
    %c0_23 = arith.constant 0 : index
    %29 = vector.load %arg2[%c0_22, %c3, %c0_23] : memref<8x8x128xf32, #tpu.memory_space<vmem>>, vector<8x1x128xf32>
    %30 = vector.shape_cast %29 : vector<8x1x128xf32> to vector<8x128xf32>
    %cst_24 = arith.constant dense<0.000000e+00> : vector<8x128xf32>
    %31 = tpu.matmul %25, %3, %cst_24 {dimension_numbers = #tpu.dot_dimension_numbers<[1], [0], [0], [1], [0, 0, 1, 1], [], []>} : vector<8x128xf32>, vector<128x128xf32>, vector<8x128xf32> -> vector<8x128xf32>
    %32 = arith.addf %30, %31 : vector<8x128xf32>
    %33 = math.tanh %32 : vector<8x128xf32>
    %c0_25 = arith.constant 0 : index
    %c3_26 = arith.constant 3 : index
    %c0_27 = arith.constant 0 : index
    %34 = vector.load %arg4[%c0_25, %c3_26, %c0_27] : memref<8x8x128xf32, #tpu.memory_space<vmem>>, vector<8x1x128xf32>
    %35 = vector.shape_cast %34 : vector<8x1x128xf32> to vector<8x128xf32>
    %36 = vector.shape_cast %33 : vector<8x128xf32> to vector<8x1x128xf32>
    tpu.vector_store %arg4[%c0_25, %c3_26, %c0_27], %36 {strides = array<i32>} : memref<8x8x128xf32, #tpu.memory_space<vmem>>, vector<8x1x128xf32>,
    %c0_28 = arith.constant 0 : index
    %c4 = arith.constant 4 : index
    %c0_29 = arith.constant 0 : index
    %37 = vector.load %arg2[%c0_28, %c4, %c0_29] : memref<8x8x128xf32, #tpu.memory_space<vmem>>, vector<8x1x128xf32>
    %38 = vector.shape_cast %37 : vector<8x1x128xf32> to vector<8x128xf32>
    %cst_30 = arith.constant dense<0.000000e+00> : vector<8x128xf32>
    %39 = tpu.matmul %33, %3, %cst_30 {dimension_numbers = #tpu.dot_dimension_numbers<[1], [0], [0], [1], [0, 0, 1, 1], [], []>} : vector<8x128xf32>, vector<128x128xf32>, vector<8x128xf32> -> vector<8x128xf32>
    %40 = arith.addf %38, %39 : vector<8x128xf32>
    %41 = math.tanh %40 : vector<8x128xf32>
    %c0_31 = arith.constant 0 : index
    %c4_32 = arith.constant 4 : index
    %c0_33 = arith.constant 0 : index
    %42 = vector.load %arg4[%c0_31, %c4_32, %c0_33] : memref<8x8x128xf32, #tpu.memory_space<vmem>>, vector<8x1x128xf32>
    %43 = vector.shape_cast %42 : vector<8x1x128xf32> to vector<8x128xf32>
    %44 = vector.shape_cast %41 : vector<8x128xf32> to vector<8x1x128xf32>
    tpu.vector_store %arg4[%c0_31, %c4_32, %c0_33], %44 {strides = array<i32>} : memref<8x8x128xf32, #tpu.memory_space<vmem>>, vector<8x1x128xf32>,
    %c0_34 = arith.constant 0 : index
    %c5 = arith.constant 5 : index
    %c0_35 = arith.constant 0 : index
    %45 = vector.load %arg2[%c0_34, %c5, %c0_35] : memref<8x8x128xf32, #tpu.memory_space<vmem>>, vector<8x1x128xf32>
    %46 = vector.shape_cast %45 : vector<8x1x128xf32> to vector<8x128xf32>
    %cst_36 = arith.constant dense<0.000000e+00> : vector<8x128xf32>
    %47 = tpu.matmul %41, %3, %cst_36 {dimension_numbers = #tpu.dot_dimension_numbers<[1], [0], [0], [1], [0, 0, 1, 1], [], []>} : vector<8x128xf32>, vector<128x128xf32>, vector<8x128xf32> -> vector<8x128xf32>
    %48 = arith.addf %46, %47 : vector<8x128xf32>
    %49 = math.tanh %48 : vector<8x128xf32>
    %c0_37 = arith.constant 0 : index
    %c5_38 = arith.constant 5 : index
    %c0_39 = arith.constant 0 : index
    %50 = vector.load %arg4[%c0_37, %c5_38, %c0_39] : memref<8x8x128xf32, #tpu.memory_space<vmem>>, vector<8x1x128xf32>
    %51 = vector.shape_cast %50 : vector<8x1x128xf32> to vector<8x128xf32>
    %52 = vector.shape_cast %49 : vector<8x128xf32> to vector<8x1x128xf32>
    tpu.vector_store %arg4[%c0_37, %c5_38, %c0_39], %52 {strides = array<i32>} : memref<8x8x128xf32, #tpu.memory_space<vmem>>, vector<8x1x128xf32>,
    %c0_40 = arith.constant 0 : index
    %c6 = arith.constant 6 : index
    %c0_41 = arith.constant 0 : index
    %53 = vector.load %arg2[%c0_40, %c6, %c0_41] : memref<8x8x128xf32, #tpu.memory_space<vmem>>, vector<8x1x128xf32>
    %54 = vector.shape_cast %53 : vector<8x1x128xf32> to vector<8x128xf32>
    %cst_42 = arith.constant dense<0.000000e+00> : vector<8x128xf32>
    %55 = tpu.matmul %49, %3, %cst_42 {dimension_numbers = #tpu.dot_dimension_numbers<[1], [0], [0], [1], [0, 0, 1, 1], [], []>} : vector<8x128xf32>, vector<128x128xf32>, vector<8x128xf32> -> vector<8x128xf32>
    %56 = arith.addf %54, %55 : vector<8x128xf32>
    %57 = math.tanh %56 : vector<8x128xf32>
    %c0_43 = arith.constant 0 : index
    %c6_44 = arith.constant 6 : index
    %c0_45 = arith.constant 0 : index
    %58 = vector.load %arg4[%c0_43, %c6_44, %c0_45] : memref<8x8x128xf32, #tpu.memory_space<vmem>>, vector<8x1x128xf32>
    %59 = vector.shape_cast %58 : vector<8x1x128xf32> to vector<8x128xf32>
    %60 = vector.shape_cast %57 : vector<8x128xf32> to vector<8x1x128xf32>
    tpu.vector_store %arg4[%c0_43, %c6_44, %c0_45], %60 {strides = array<i32>} : memref<8x8x128xf32, #tpu.memory_space<vmem>>, vector<8x1x128xf32>,
    %c0_46 = arith.constant 0 : index
    %c7 = arith.constant 7 : index
    %c0_47 = arith.constant 0 : index
    %61 = vector.load %arg2[%c0_46, %c7, %c0_47] : memref<8x8x128xf32, #tpu.memory_space<vmem>>, vector<8x1x128xf32>
    %62 = vector.shape_cast %61 : vector<8x1x128xf32> to vector<8x128xf32>
    %cst_48 = arith.constant dense<0.000000e+00> : vector<8x128xf32>
    %63 = tpu.matmul %57, %3, %cst_48 {dimension_numbers = #tpu.dot_dimension_numbers<[1], [0], [0], [1], [0, 0, 1, 1], [], []>} : vector<8x128xf32>, vector<128x128xf32>, vector<8x128xf32> -> vector<8x128xf32>
    %64 = arith.addf %62, %63 : vector<8x128xf32>
    %65 = math.tanh %64 : vector<8x128xf32>
    %c0_49 = arith.constant 0 : index
    %c7_50 = arith.constant 7 : index
    %c0_51 = arith.constant 0 : index
    %66 = vector.load %arg4[%c0_49, %c7_50, %c0_51] : memref<8x8x128xf32, #tpu.memory_space<vmem>>, vector<8x1x128xf32>
    %67 = vector.shape_cast %66 : vector<8x1x128xf32> to vector<8x128xf32>
    %68 = vector.shape_cast %65 : vector<8x128xf32> to vector<8x1x128xf32>
    tpu.vector_store %arg4[%c0_49, %c7_50, %c0_51], %68 {strides = array<i32>} : memref<8x8x128xf32, #tpu.memory_space<vmem>>, vector<8x1x128xf32>,
    %c0_52 = arith.constant 0 : index
    %c0_53 = arith.constant 0 : index
    %69 = vector.load %arg5[%c0_52, %c0_53] : memref<8x128xf32, #tpu.memory_space<vmem>>, vector<8x128xf32>
    tpu.vector_store %arg5[%c0_52, %c0_53], %65 {strides = array<i32>} : memref<8x128xf32, #tpu.memory_space<vmem>>, vector<8x128xf32>,
    return
  }
  func.func @transform_0(%arg0: i32, %arg1: i32) -> (i32, i32, i32) {
    %c0_i32 = arith.constant 0 : i32
    %c0_i32_0 = arith.constant 0 : i32
    return %arg0, %arg1, %c0_i32 : i32, i32, i32
  }
  func.func @transform_1(%arg0: i32, %arg1: i32) -> (i32, i32) {
    %c0_i32 = arith.constant 0 : i32
    %c0_i32_0 = arith.constant 0 : i32
    %c0_i32_1 = arith.constant 0 : i32
    return %c0_i32, %c0_i32_0 : i32, i32
  }
  func.func @transform_2(%arg0: i32, %arg1: i32) -> (i32, i32, i32) {
    %c0_i32 = arith.constant 0 : i32
    %c0_i32_0 = arith.constant 0 : i32
    return %arg0, %arg1, %c0_i32 : i32, i32, i32
  }
}

</mosaic_0001>

<bundles_post_ra>
// kernel: rnn_forward.2
= control target key start
LH: loop header
LB: loop body
LE: loop exit
PB: predicated region body
PF: predicated region fallthrough
CT: control target
= control target key end

     0   :  { %vm31_vm0 = vcmask 130048   ;;  %s299_s1 = inlined_call_operand.vmem [shape: f32[16,128], index: 1, kind: input, shape index: {}]   ;;  %s300_s0 = inlined_call_operand.vmem [shape: f32[64,16], index: 0, kind: input, shape index: {}]   ;;  %s301_s2 = inlined_call_operand.vmem [shape: f32[1,128], index: 2, kind: input, shape index: {}]   ;;  %s302_s3 = inlined_call_operand.vmem [shape: f32[64,128], index: 3, kind: output, shape index: {}]  }
   0x1   :  { %v22_v0 = vld [vmem:[%s299_s1] sm:$0xff]  ;;  %v23_v1 = vld [vmem:[%s299_s1 + $0x8] sm:$0xff]  ;;  %v16_v7 = vld [vmem:[%s300_s0 + $0x10] sm:$0xff] }
   0x2   :  { %v14_v2 = vld [vmem:[%s300_s0] sm:$0xff]  ;;  %v208_v3 = vpack.c.bf16 %v23_v1, %v22_v0  ;;  %v15_v5 = vld [vmem:[%s300_s0 + $0x8] sm:$0xff]  ;;  %v20_v8 = vld [vmem:[%s300_s0 + $0x30] sm:$0xff] }
   0x3   :  { %196 = vmatprep.mubr.msk.f32.mxu0 %vm31_vm0, %v14_v2  ;;  %v18_v4 = vld [vmem:[%s300_s0 + $0x20] sm:$0xff]  ;;  %v19_v6 = vld [vmem:[%s300_s0 + $0x28] sm:$0xff]  ;;  %v17_v9 = vld [vmem:[%s300_s0 + $0x18] sm:$0xff] }
   0x4   :  { %202 = vmatprep.mubr.msk.f32.mxu1 %vm31_vm0, %v18_v4  ;;  %209 = vmatprep.subr.bf16.mxu0 %v208_v3  ;;  %v21_v10 = vld [vmem:[%s300_s0 + $0x38] sm:$0xff]  ;;  %v173_v11 = vld [vmem:[%s301_s2] ss:$0 sm:$0xff] }
   0x5   :  { %212 = vmatprep.subr.bf16.mxu1 %v208_v3  ;;  %211 = vmatpush3.bf16.msra.mxu0 %v208_v3 }
   0x6   :  { %213 = vmatpush3.bf16.msra.mxu1 %v208_v3 }
   0x8   :  { %197 = vmatmul.mubr.msk.f32.vlgmr.msra.gmra.mrb[0].mxu0 %vm31_vm0, %v15_v5 }
   0x9   :  { %203 = vmatmul.mubr.msk.f32.vlgmr.msra.gmra.mrb[0].mxu1 %vm31_vm0, %v19_v6  ;;  %199 = vmatprep.mubr.msk.f32.mxu0 %vm31_vm0, %v16_v7 }
   0xa   :  { %205 = vmatprep.mubr.msk.f32.mxu1 %vm31_vm0, %v20_v8 }
   0xc   :  { %200 = vmatmul.mubr.msk.f32.gmra.mrb[2].mxu0 %vm31_vm0, %v17_v9 }
   0xd   :  { %206 = vmatmul.mubr.msk.f32.gmra.mrb[2].mxu1 %vm31_vm0, %v21_v10 }
  0xdb   :  { %v198_v12 = vpop.f32.mrb[0].mxu0 }
  0xdc   :  { %v204_v13 = vpop.f32.mrb[0].mxu1  ;;  %v128_v14 = vadd.f32 %v198_v12, %v173_v11  ;;  %v122_v16 = vpop.f32.mrb[1].mxu0 }
  0xdd   :  { %v148_v15 = vadd.f32 %v204_v13, %v173_v11  ;;  %v142_v17 = vpop.f32.mrb[1].mxu1  ;;  %v123_v18 = vadd.f32 %v173_v11, %v122_v16 }
  0xde   :  { %v143_v19 = vadd.f32 %v173_v11, %v142_v17  ;;  %162 = vst [vmem:[%s302_s3 + $0x8] sm:$0xff] %v128_v14 }
  0xdf   :  { %166 = vst [vmem:[%s302_s3 + $0x28] sm:$0xff] %v148_v15  ;;  %161 = vst [vmem:[%s302_s3] sm:$0xff] %v123_v18  ;;  %v201_v20 = vpop.f32.mrb[2].mxu0 }
  0xe0   :  { %165 = vst [vmem:[%s302_s3 + $0x20] sm:$0xff] %v143_v19  ;;  %v207_v21 = vpop.f32.mrb[2].mxu1  ;;  %v138_v22 = vadd.f32 %v201_v20, %v173_v11  ;;  %v132_v24 = vpop.f32.mrb[3].mxu0 }
  0xe1   :  { %v158_v23 = vadd.f32 %v207_v21, %v173_v11  ;;  %v152_v25 = vpop.f32.mrb[3].mxu1  ;;  %v133_v26 = vadd.f32 %v173_v11, %v132_v24 }
  0xe2   :  { %v153_v27 = vadd.f32 %v173_v11, %v152_v25  ;;  %164 = vst [vmem:[%s302_s3 + $0x18] sm:$0xff] %v138_v22 }
  0xe3   :  { %168 = vst [vmem:[%s302_s3 + $0x38] sm:$0xff] %v158_v23  ;;  %163 = vst [vmem:[%s302_s3 + $0x10] sm:$0xff] %v133_v26 }
  0xe4   :  { %167 = vst [vmem:[%s302_s3 + $0x30] sm:$0xff] %v153_v27 }

// kernel: rnn_forward.3
= control target key start
LH: loop header
LB: loop body
LE: loop exit
PB: predicated region body
PF: predicated region fallthrough
CT: control target
= control target key end

     0   :  { %v1912_v0 = vmov 0.0|0.0   ;;  %vm1913_vm0 = vmmov 0   ;;  %v1914_v4 = vmov 0.0   ;;  %vm168_vm1 = vcmask 1041409   ;;  %s2572_s1 = inlined_call_operand.vmem [shape: f32[128,128], index: 1, kind: input, shape index: {}]   ;;  %s2573_s0 = inlined_call_operand.vmem [shape: f32[8,8,128], index: 0, kind: input, shape index: {}]   ;;  %s2574_s2 = inlined_call_operand.vmem [shape: f32[8,8,128], index: 2, kind: output, shape index: {}]  }
   0x1   :  { %1589 = vmatprep.subr.bf16.mxu0 %v1912_v0  ;;  %v16_v1 = vld [vmem:[%s2572_s1] sm:$0xff]  ;;  %v17_v2 = vld [vmem:[%s2572_s1 + $0x8] sm:$0xff]  ;;  %v18_v3 = vld [vmem:[%s2572_s1 + $0x10] sm:$0xff]  ;;  %1341 = vmatprep.mubr.msk.f32.mxu0 %vm1913_vm0, %v1914_v4  ;;  %vm171_vm2 = vcmask 1042434   ;;  %vm174_vm3 = vcmask 1043459   ;;  %vm177_vm4 = vcmask 1044484  }
   0x2   :  { %v1942_v5 = vpack.c.bf16 %v17_v2, %v16_v1  ;;  %v19_v6 = vld [vmem:[%s2572_s1 + $0x18] sm:$0xff]  ;;  %1613 = vmatprep.subr.bf16.mxu1 %v1912_v0  ;;  %1376 = vmatprep.mubr.msk.f32.mxu1 %vm1913_vm0, %v1914_v4  ;;  %v20_v8 = vld [vmem:[%s2572_s1 + $0x20] sm:$0xff]  ;;  %v21_v9 = vld [vmem:[%s2572_s1 + $0x28] sm:$0xff]  ;;  %vm180_vm5 = vcmask 1045509   ;;  %vm183_vm6 = vcmask 1046534   ;;  %vm186_vm7 = vcmask 1047559  }
   0x3   :  { %v1951_v7 = vpack.c.bf16 %v19_v6, %v18_v3  ;;  %v1963_v10 = vpack.c.bf16 %v21_v9, %v20_v8  ;;  %v22_v11 = vld [vmem:[%s2572_s1 + $0x30] sm:$0xff]  ;;  %v23_v12 = vld [vmem:[%s2572_s1 + $0x38] sm:$0xff]  ;;  %v24_v14 = vld [vmem:[%s2572_s1 + $0x40] sm:$0xff] }
   0x4   :  { %1591 = vmatpush3.bf16.msra.mxu0 %v1942_v5  ;;  %1615 = vmatpush3.bf16.msra.mxu1 %v1942_v5  ;;  %v1975_v13 = vpack.c.bf16 %v23_v12, %v22_v11  ;;  %v25_v15 = vld [vmem:[%s2572_s1 + $0x48] sm:$0xff]  ;;  %v26_v17 = vld [vmem:[%s2572_s1 + $0x50] sm:$0xff]  ;;  %v27_v18 = vld [vmem:[%s2572_s1 + $0x58] sm:$0xff] }
   0x5   :  { %1592 = vmatprep.subr.bf16.mxu0 %v1912_v0  ;;  %1616 = vmatprep.subr.bf16.mxu1 %v1912_v0  ;;  %v1987_v16 = vpack.c.bf16 %v25_v15, %v24_v14  ;;  %v1999_v19 = vpack.c.bf16 %v27_v18, %v26_v17  ;;  %v28_v20 = vld [vmem:[%s2572_s1 + $0x60] sm:$0xff]  ;;  %v29_v21 = vld [vmem:[%s2572_s1 + $0x68] sm:$0xff]  ;;  %v30_v23 = vld [vmem:[%s2572_s1 + $0x70] sm:$0xff] }
   0x6   :  { %v2011_v22 = vpack.c.bf16 %v29_v21, %v28_v20  ;;  %v31_v24 = vld [vmem:[%s2572_s1 + $0x78] sm:$0xff]  ;;  %v33_v26 = vld [vmem:[%s2573_s0] sm:$0x1]  ;;  %v34_v27 = vld [vmem:[%s2573_s0 + $0x8] sm:$0x1] }
   0x7   :  { %v2023_v25 = vpack.c.bf16 %v31_v24, %v30_v23  ;;  %v35_v28 = vld [vmem:[%s2573_s0 + $0x10] sm:$0x1]  ;;  %v36_v29 = vld [vmem:[%s2573_s0 + $0x18] sm:$0x1]  ;;  %v37_v30 = vld [vmem:[%s2573_s0 + $0x20] sm:$0x1] }
   0x8   :  { %1594 = vmatpush3.bf16.msra.mxu0 %v1951_v7  ;;  %1618 = vmatpush3.bf16.msra.mxu1 %v1951_v7  ;;  %v38_v37 = vld [vmem:[%s2573_s0 + $0x28] sm:$0x1]  ;;  %v39_v44 = vld [vmem:[%s2573_s0 + $0x30] sm:$0x1]  ;;  %v40_v47 = vld [vmem:[%s2573_s0 + $0x38] sm:$0x1] }
   0x9   :  { %1595 = vmatprep.subr.bf16.mxu0 %v1912_v0  ;;  %1619 = vmatprep.subr.bf16.mxu1 %v1912_v0  ;;  %v151_v15 = vld [vmem:[%s2573_s0 + $0x1] sm:$0x1]  ;;  %v152_v17 = vld [vmem:[%s2573_s0 + $0x9] sm:$0x1]  ;;  %v153_v18 = vld [vmem:[%s2573_s0 + $0x11] sm:$0x1] }
   0xa   :  { %v154_v20 = vld [vmem:[%s2573_s0 + $0x19] sm:$0x1]  ;;  %v155_v21 = vld [vmem:[%s2573_s0 + $0x21] sm:$0x1] }
   0xc   :  { %1597 = vmatpush3.bf16.msra.mxu0 %v1963_v10  ;;  %1621 = vmatpush3.bf16.msra.mxu1 %v1963_v10 }
   0xd   :  { %1598 = vmatprep.subr.bf16.mxu0 %v1912_v0  ;;  %1622 = vmatprep.subr.bf16.mxu1 %v1912_v0 }
  0x10   :  { %1600 = vmatpush3.bf16.msra.mxu0 %v1975_v13  ;;  %1624 = vmatpush3.bf16.msra.mxu1 %v1975_v13 }
  0x11   :  { %1601 = vmatprep.subr.bf16.mxu0 %v1912_v0  ;;  %1625 = vmatprep.subr.bf16.mxu1 %v1912_v0 }
  0x14   :  { %1603 = vmatpush3.bf16.msra.mxu0 %v1987_v16  ;;  %1627 = vmatpush3.bf16.msra.mxu1 %v1987_v16 }
  0x15   :  { %1604 = vmatprep.subr.bf16.mxu0 %v1912_v0  ;;  %1628 = vmatprep.subr.bf16.mxu1 %v1912_v0 }
  0x18   :  { %1606 = vmatpush3.bf16.msra.mxu0 %v1999_v19  ;;  %1630 = vmatpush3.bf16.msra.mxu1 %v1999_v19 }
  0x19   :  { %1607 = vmatprep.subr.bf16.mxu0 %v1912_v0  ;;  %1631 = vmatprep.subr.bf16.mxu1 %v1912_v0 }
  0x1c   :  { %1609 = vmatpush3.bf16.msra.mxu0 %v2011_v22  ;;  %1633 = vmatpush3.bf16.msra.mxu1 %v2011_v22 }
  0x1d   :  { %1610 = vmatprep.subr.bf16.mxu0 %v1912_v0  ;;  %1634 = vmatprep.subr.bf16.mxu1 %v1912_v0 }
  0x20   :  { %1612 = vmatpush3.bf16.msra.mxu0 %v2023_v25  ;;  %1636 = vmatpush3.bf16.msra.mxu1 %v2023_v25 }
  0x21   :  { %1637 = vmatprep.subr.bf16.mxu0 %v1912_v0  ;;  %1661 = vmatprep.subr.bf16.mxu1 %v1912_v0 }
  0x23   :  { %1342 = vmatmul.mubr.f32.vlgmr.msra.gmra.mrb[0].mxu0 %v1914_v4 }
  0x24   :  { %1639 = vmatpush3.bf16.msra.mxu0 %v1942_v5  ;;  %1411 = vmatprep.mubr.msk.f32.mxu0 %vm1913_vm0, %v1914_v4 }
  0x25   :  { %1640 = vmatprep.subr.bf16.mxu0 %v1912_v0 }
  0x28   :  { %1642 = vmatpush3.bf16.msra.mxu0 %v1951_v7 }
  0x29   :  { %1643 = vmatprep.subr.bf16.mxu0 %v1912_v0 }
  0x2c   :  { %1645 = vmatpush3.bf16.msra.mxu0 %v1963_v10 }
  0x2d   :  { %1646 = vmatprep.subr.bf16.mxu0 %v1912_v0 }
  0x30   :  { %1648 = vmatpush3.bf16.msra.mxu0 %v1975_v13 }
  0x31   :  { %1649 = vmatprep.subr.bf16.mxu0 %v1912_v0 }
  0x34   :  { %1651 = vmatpush3.bf16.msra.mxu0 %v1987_v16 }
  0x35   :  { %1652 = vmatprep.subr.bf16.mxu0 %v1912_v0 }
  0x38   :  { %1654 = vmatpush3.bf16.msra.mxu0 %v1999_v19 }
  0x39   :  { %1655 = vmatprep.subr.bf16.mxu0 %v1912_v0 }
  0x3c   :  { %1657 = vmatpush3.bf16.msra.mxu0 %v2011_v22 }
  0x3d   :  { %1658 = vmatprep.subr.bf16.mxu0 %v1912_v0 }
  0x40   :  { %1660 = vmatpush3.bf16.msra.mxu0 %v2023_v25 }
  0x41   :  { %1685 = vmatprep.subr.bf16.mxu0 %v1912_v0 }
  0xf6   :  { %v107_v31 = vpop.f32.mrb[0].mxu0 }
  0xf7   :  { %v112_v32 = vrot.slane %v107_v31, 1  ;;  %v113_v33 = vrot.slane %v107_v31, 2  ;;  %v114_v34 = vrot.slane %v107_v31, 3  ;;  %v115_v35 = vrot.slane %v107_v31, 4  ;;  %v1343_v36 = vpop.f32.mrb[1].mxu0 }
  0xf8   :  { %v116_v38 = vrot.slane %v107_v31, 5  ;;  %v117_v39 = vrot.slane %v107_v31, 6  ;;  %v127_v40 = vadd.f32 %v107_v31, %v33_v26  ;;  %v118_v45 = vrot.slane %v107_v31, 7 }
  0xf9   :  { %v128_v41 = vadd.f32 %v112_v32, %v34_v27  ;;  %v129_v42 = vadd.f32 %v113_v33, %v35_v28  ;;  %v130_v43 = vadd.f32 %v114_v34, %v36_v29  ;;  %v131_v46 = vadd.f32 %v115_v35, %v37_v30  ;;  %v156_v30 = vld [vmem:[%s2573_s0 + $0x29] sm:$0x1] }
  0xfa   :  { %1784 = vtanh.f32 %v127_v40  ;;  %v132_v48 = vadd.f32 %v116_v38, %v38_v37  ;;  %v133_v49 = vadd.f32 %v117_v39, %v39_v44  ;;  %v134_v50 = vadd.f32 %v118_v45, %v40_v47  ;;  %v157_v38 = vld [vmem:[%s2573_s0 + $0x31] sm:$0x1]  ;;  %v158_v40 = vld [vmem:[%s2573_s0 + $0x39] sm:$0x1] }
  0xfb   :  { %1786 = vtanh.f32 %v128_v41 }
  0xfc   :  { %1788 = vtanh.f32 %v129_v42 }
  0xfd   :  { %1790 = vtanh.f32 %v130_v43 }
  0xfe   :  { %1792 = vtanh.f32 %v131_v46 }
  0xff   :  { %1794 = vtanh.f32 %v132_v48 }
 0x100   :  { %1796 = vtanh.f32 %v133_v49 }
 0x101   :  { %1798 = vtanh.f32 %v134_v50 }
 0x104   :  { %v1785_v51 = vpop.eup %1784 }
 0x105   :  { %v1787_v52 = vpop.eup %1786  ;;  %143 = vst [vmem:[%s2574_s2] sm:$0x1] %v1785_v51 }
 0x106   :  { %v1789_v53 = vpop.eup %1788  ;;  %144 = vst [vmem:[%s2574_s2 + $0x8] sm:$0x1] %v1787_v52  ;;  %v167_v54 = vrot.slane %v1787_v52, 7 }
 0x107   :  { %v1791_v55 = vpop.eup %1790  ;;  %145 = vst [vmem:[%s2574_s2 + $0x10] sm:$0x1] %v1789_v53  ;;  %v170_v56 = vrot.slane %v1789_v53, 6 }
 0x108   :  { %v1793_v57 = vpop.eup %1792  ;;  %146 = vst [vmem:[%s2574_s2 + $0x18] sm:$0x1] %v1791_v55  ;;  %v169_v58 = vsel %vm168_vm1, %v167_v54, %v1785_v51  ;;  %v173_v59 = vrot.slane %v1791_v55, 5 }
 0x109   :  { %v1795_v60 = vpop.eup %1794  ;;  %147 = vst [vmem:[%s2574_s2 + $0x20] sm:$0x1] %v1793_v57  ;;  %v172_v61 = vsel %vm171_vm2, %v170_v56, %v169_v58  ;;  %v176_v62 = vrot.slane %v1793_v57, 4 }
 0x10a   :  { %v1797_v63 = vpop.eup %1796  ;;  %148 = vst [vmem:[%s2574_s2 + $0x28] sm:$0x1] %v1795_v60  ;;  %v175_v1 = vsel %vm174_vm3, %v173_v59, %v172_v61  ;;  %v179_v2 = vrot.slane %v1795_v60, 3 }
 0x10b   :  { %v1799_v3 = vpop.eup %1798  ;;  %149 = vst [vmem:[%s2574_s2 + $0x30] sm:$0x1] %v1797_v63  ;;  %v178_v6 = vsel %vm177_vm4, %v176_v62, %v175_v1  ;;  %v182_v8 = vrot.slane %v1797_v63, 2 }
 0x10c   :  { %150 = vst [vmem:[%s2574_s2 + $0x38] sm:$0x1] %v1799_v3  ;;  %v181_v9 = vsel %vm180_vm5, %v179_v2, %v178_v6  ;;  %v185_v11 = vrot.slane %v1799_v3, 1  ;;  %v299_v3 = vld [vmem:[%s2573_s0 + $0x2] sm:$0x1] }
 0x10d   :  { %v184_v12 = vsel %vm183_vm6, %v182_v8, %v181_v9  ;;  %v300_v6 = vld [vmem:[%s2573_s0 + $0xa] sm:$0x1]  ;;  %v301_v8 = vld [vmem:[%s2573_s0 + $0x12] sm:$0x1]  ;;  %v302_v9 = vld [vmem:[%s2573_s0 + $0x1a] sm:$0x1] }
 0x10e   :  { %v187_v14 = vsel %vm186_vm7, %v185_v11, %v184_v12  ;;  %v303_v11 = vld [vmem:[%s2573_s0 + $0x22] sm:$0x1] }
 0x10f   :  { %1377 = vmatmul.mubr.f32.vlgmr.msra.gmra.mrb[0].mxu1 %v187_v14 }
 0x110   :  { %1663 = vmatpush3.bf16.msra.mxu1 %v1942_v5  ;;  %1446 = vmatprep.mubr.msk.f32.mxu1 %vm1913_vm0, %v1914_v4 }
 0x111   :  { %1664 = vmatprep.subr.bf16.mxu1 %v1912_v0 }
 0x114   :  { %1666 = vmatpush3.bf16.msra.mxu1 %v1951_v7 }
 0x115   :  { %1667 = vmatprep.subr.bf16.mxu1 %v1912_v0 }
 0x118   :  { %1669 = vmatpush3.bf16.msra.mxu1 %v1963_v10 }
 0x119   :  { %1670 = vmatprep.subr.bf16.mxu1 %v1912_v0 }
 0x11c   :  { %1672 = vmatpush3.bf16.msra.mxu1 %v1975_v13 }
 0x11d   :  { %1673 = vmatprep.subr.bf16.mxu1 %v1912_v0 }
 0x120   :  { %1675 = vmatpush3.bf16.msra.mxu1 %v1987_v16 }
 0x121   :  { %1676 = vmatprep.subr.bf16.mxu1 %v1912_v0 }
 0x124   :  { %1678 = vmatpush3.bf16.msra.mxu1 %v1999_v19 }
 0x125   :  { %1679 = vmatprep.subr.bf16.mxu1 %v1912_v0 }
 0x128   :  { %1681 = vmatpush3.bf16.msra.mxu1 %v2011_v22 }
 0x129   :  { %1682 = vmatprep.subr.bf16.mxu1 %v1912_v0 }
 0x12c   :  { %1684 = vmatpush3.bf16.msra.mxu1 %v2023_v25 }
 0x12d   :  { %1709 = vmatprep.subr.bf16.mxu1 %v1912_v0 }
 0x1e2   :  { %v255_v23 = vpop.f32.mrb[0].mxu1 }
 0x1e3   :  { %v260_v24 = vrot.slane %v255_v23, 1  ;;  %v261_v26 = vrot.slane %v255_v23, 2  ;;  %v262_v27 = vrot.slane %v255_v23, 3  ;;  %v263_v28 = vrot.slane %v255_v23, 4  ;;  %v1378_v29 = vpop.f32.mrb[1].mxu1 }
 0x1e4   :  { %v264_v31 = vrot.slane %v255_v23, 5  ;;  %v265_v32 = vrot.slane %v255_v23, 6  ;;  %v275_v33 = vadd.f32 %v255_v23, %v151_v15  ;;  %v266_v34 = vrot.slane %v255_v23, 7 }
 0x1e5   :  { %v276_v35 = vadd.f32 %v260_v24, %v152_v17  ;;  %v277_v36 = vadd.f32 %v261_v26, %v153_v18  ;;  %v278_v37 = vadd.f32 %v262_v27, %v154_v20  ;;  %v279_v39 = vadd.f32 %v263_v28, %v155_v21  ;;  %v304_v21 = vld [vmem:[%s2573_s0 + $0x2a] sm:$0x1] }
 0x1e6   :  { %1800 = vtanh.f32 %v275_v33  ;;  %v280_v41 = vadd.f32 %v264_v31, %v156_v30  ;;  %v281_v42 = vadd.f32 %v265_v32, %v157_v38  ;;  %v282_v43 = vadd.f32 %v266_v34, %v158_v40  ;;  %v305_v31 = vld [vmem:[%s2573_s0 + $0x32] sm:$0x1]  ;;  %v306_v33 = vld [vmem:[%s2573_s0 + $0x3a] sm:$0x1] }
 0x1e7   :  { %1802 = vtanh.f32 %v276_v35 }
 0x1e8   :  { %1804 = vtanh.f32 %v277_v36 }
 0x1e9   :  { %1806 = vtanh.f32 %v278_v37 }
 0x1ea   :  { %1808 = vtanh.f32 %v279_v39 }
 0x1eb   :  { %1810 = vtanh.f32 %v280_v41 }
 0x1ec   :  { %1812 = vtanh.f32 %v281_v42 }
 0x1ed   :  { %1814 = vtanh.f32 %v282_v43 }
 0x1f0   :  { %v1801_v44 = vpop.eup %1800 }
 0x1f1   :  { %v1803_v45 = vpop.eup %1802  ;;  %291 = vst [vmem:[%s2574_s2 + $0x1] sm:$0x1] %v1801_v44 }
 0x1f2   :  { %v1805_v46 = vpop.eup %1804  ;;  %292 = vst [vmem:[%s2574_s2 + $0x9] sm:$0x1] %v1803_v45  ;;  %v315_v47 = vrot.slane %v1803_v45, 7 }
 0x1f3   :  { %v1807_v48 = vpop.eup %1806  ;;  %293 = vst [vmem:[%s2574_s2 + $0x11] sm:$0x1] %v1805_v46  ;;  %v317_v49 = vrot.slane %v1805_v46, 6 }
 0x1f4   :  { %v1809_v50 = vpop.eup %1808  ;;  %294 = vst [vmem:[%s2574_s2 + $0x19] sm:$0x1] %v1807_v48  ;;  %v316_v51 = vsel %vm168_vm1, %v315_v47, %v1801_v44  ;;  %v319_v52 = vrot.slane %v1807_v48, 5 }
 0x1f5   :  { %v1811_v53 = vpop.eup %1810  ;;  %295 = vst [vmem:[%s2574_s2 + $0x21] sm:$0x1] %v1809_v50  ;;  %v318_v54 = vsel %vm171_vm2, %v317_v49, %v316_v51  ;;  %v321_v55 = vrot.slane %v1809_v50, 4 }
 0x1f6   :  { %v1813_v56 = vpop.eup %1812  ;;  %296 = vst [vmem:[%s2574_s2 + $0x29] sm:$0x1] %v1811_v53  ;;  %v320_v57 = vsel %vm174_vm3, %v319_v52, %v318_v54  ;;  %v323_v58 = vrot.slane %v1811_v53, 3 }
 0x1f7   :  { %v1815_v59 = vpop.eup %1814  ;;  %297 = vst [vmem:[%s2574_s2 + $0x31] sm:$0x1] %v1813_v56  ;;  %v322_v60 = vsel %vm177_vm4, %v321_v55, %v320_v57  ;;  %v325_v61 = vrot.slane %v1813_v56, 2 }
 0x1f8   :  { %298 = vst [vmem:[%s2574_s2 + $0x39] sm:$0x1] %v1815_v59  ;;  %v324_v62 = vsel %vm180_vm5, %v323_v58, %v322_v60  ;;  %v327_v63 = vrot.slane %v1815_v59, 1  ;;  %v440_v59 = vld [vmem:[%s2573_s0 + $0x3] sm:$0x1] }
 0x1f9   :  { %v326_v1 = vsel %vm183_vm6, %v325_v61, %v324_v62  ;;  %v441_v60 = vld [vmem:[%s2573_s0 + $0xb] sm:$0x1]  ;;  %v442_v61 = vld [vmem:[%s2573_s0 + $0x13] sm:$0x1]  ;;  %v443_v62 = vld [vmem:[%s2573_s0 + $0x1b] sm:$0x1] }
 0x1fa   :  { %v328_v2 = vsel %vm186_vm7, %v327_v63, %v326_v1  ;;  %v444_v63 = vld [vmem:[%s2573_s0 + $0x23] sm:$0x1] }
 0x1fb   :  { %1412 = vmatmul.mubr.f32.vlgmr.msra.gmra.mrb[2].mxu0 %v328_v2 }
 0x1fc   :  { %1687 = vmatpush3.bf16.msra.mxu0 %v1942_v5  ;;  %1481 = vmatprep.mubr.msk.f32.mxu0 %vm1913_vm0, %v1914_v4 }
 0x1fd   :  { %1688 = vmatprep.subr.bf16.mxu0 %v1912_v0 }
 0x200   :  { %1690 = vmatpush3.bf16.msra.mxu0 %v1951_v7 }
 0x201   :  { %1691 = vmatprep.subr.bf16.mxu0 %v1912_v0 }
 0x204   :  { %1693 = vmatpush3.bf16.msra.mxu0 %v1963_v10 }
 0x205   :  { %1694 = vmatprep.subr.bf16.mxu0 %v1912_v0 }
 0x208   :  { %1696 = vmatpush3.bf16.msra.mxu0 %v1975_v13 }
 0x209   :  { %1697 = vmatprep.subr.bf16.mxu0 %v1912_v0 }
 0x20c   :  { %1699 = vmatpush3.bf16.msra.mxu0 %v1987_v16 }
 0x20d   :  { %1700 = vmatprep.subr.bf16.mxu0 %v1912_v0 }
 0x210   :  { %1702 = vmatpush3.bf16.msra.mxu0 %v1999_v19 }
 0x211   :  { %1703 = vmatprep.subr.bf16.mxu0 %v1912_v0 }
 0x214   :  { %1705 = vmatpush3.bf16.msra.mxu0 %v2011_v22 }
 0x215   :  { %1706 = vmatprep.subr.bf16.mxu0 %v1912_v0 }
 0x218   :  { %1708 = vmatpush3.bf16.msra.mxu0 %v2023_v25 }
 0x219   :  { %1733 = vmatprep.subr.bf16.mxu0 %v1912_v0 }
 0x2ce   :  { %v396_v12 = vpop.f32.mrb[2].mxu0 }
 0x2cf   :  { %v401_v14 = vrot.slane %v396_v12, 1  ;;  %v402_v15 = vrot.slane %v396_v12, 2  ;;  %v403_v17 = vrot.slane %v396_v12, 3  ;;  %v404_v18 = vrot.slane %v396_v12, 4  ;;  %v1413_v20 = vpop.f32.mrb[3].mxu0 }
 0x2d0   :  { %v405_v23 = vrot.slane %v396_v12, 5  ;;  %v406_v24 = vrot.slane %v396_v12, 6  ;;  %v416_v26 = vadd.f32 %v396_v12, %v299_v3  ;;  %v407_v27 = vrot.slane %v396_v12, 7 }
 0x2d1   :  { %v417_v28 = vadd.f32 %v401_v14, %v300_v6  ;;  %v418_v29 = vadd.f32 %v402_v15, %v301_v8  ;;  %v419_v30 = vadd.f32 %v403_v17, %v302_v9  ;;  %v420_v32 = vadd.f32 %v404_v18, %v303_v11  ;;  %v445_v11 = vld [vmem:[%s2573_s0 + $0x2b] sm:$0x1] }
 0x2d2   :  { %1816 = vtanh.f32 %v416_v26  ;;  %v421_v34 = vadd.f32 %v405_v23, %v304_v21  ;;  %v422_v35 = vadd.f32 %v406_v24, %v305_v31  ;;  %v423_v36 = vadd.f32 %v407_v27, %v306_v33  ;;  %v446_v23 = vld [vmem:[%s2573_s0 + $0x33] sm:$0x1]  ;;  %v447_v26 = vld [vmem:[%s2573_s0 + $0x3b] sm:$0x1] }
 0x2d3   :  { %1818 = vtanh.f32 %v417_v28 }
 0x2d4   :  { %1820 = vtanh.f32 %v418_v29 }
 0x2d5   :  { %1822 = vtanh.f32 %v419_v30 }
 0x2d6   :  { %1824 = vtanh.f32 %v420_v32 }
 0x2d7   :  { %1826 = vtanh.f32 %v421_v34 }
 0x2d8   :  { %1828 = vtanh.f32 %v422_v35 }
 0x2d9   :  { %1830 = vtanh.f32 %v423_v36 }
 0x2dc   :  { %v1817_v37 = vpop.eup %1816 }
 0x2dd   :  { %v1819_v38 = vpop.eup %1818  ;;  %432 = vst [vmem:[%s2574_s2 + $0x2] sm:$0x1] %v1817_v37 }
 0x2de   :  { %v1821_v39 = vpop.eup %1820  ;;  %433 = vst [vmem:[%s2574_s2 + $0xa] sm:$0x1] %v1819_v38  ;;  %v456_v40 = vrot.slane %v1819_v38, 7 }
 0x2df   :  { %v1823_v41 = vpop.eup %1822  ;;  %434 = vst [vmem:[%s2574_s2 + $0x12] sm:$0x1] %v1821_v39  ;;  %v458_v42 = vrot.slane %v1821_v39, 6 }
 0x2e0   :  { %v1825_v43 = vpop.eup %1824  ;;  %435 = vst [vmem:[%s2574_s2 + $0x1a] sm:$0x1] %v1823_v41  ;;  %v457_v44 = vsel %vm168_vm1, %v456_v40, %v1817_v37  ;;  %v460_v45 = vrot.slane %v1823_v41, 5 }
 0x2e1   :  { %v1827_v46 = vpop.eup %1826  ;;  %436 = vst [vmem:[%s2574_s2 + $0x22] sm:$0x1] %v1825_v43  ;;  %v459_v47 = vsel %vm171_vm2, %v458_v42, %v457_v44  ;;  %v462_v48 = vrot.slane %v1825_v43, 4 }
 0x2e2   :  { %v1829_v49 = vpop.eup %1828  ;;  %437 = vst [vmem:[%s2574_s2 + $0x2a] sm:$0x1] %v1827_v46  ;;  %v461_v50 = vsel %vm174_vm3, %v460_v45, %v459_v47  ;;  %v464_v51 = vrot.slane %v1827_v46, 3 }
 0x2e3   :  { %v1831_v52 = vpop.eup %1830  ;;  %438 = vst [vmem:[%s2574_s2 + $0x32] sm:$0x1] %v1829_v49  ;;  %v463_v53 = vsel %vm177_vm4, %v462_v48, %v461_v50  ;;  %v466_v54 = vrot.slane %v1829_v49, 2 }
 0x2e4   :  { %439 = vst [vmem:[%s2574_s2 + $0x3a] sm:$0x1] %v1831_v52  ;;  %v465_v55 = vsel %vm180_vm5, %v464_v51, %v463_v53  ;;  %v468_v56 = vrot.slane %v1831_v52, 1  ;;  %v581_v52 = vld [vmem:[%s2573_s0 + $0x4] sm:$0x1] }
 0x2e5   :  { %v467_v57 = vsel %vm183_vm6, %v466_v54, %v465_v55  ;;  %v582_v53 = vld [vmem:[%s2573_s0 + $0xc] sm:$0x1]  ;;  %v583_v54 = vld [vmem:[%s2573_s0 + $0x14] sm:$0x1]  ;;  %v584_v55 = vld [vmem:[%s2573_s0 + $0x1c] sm:$0x1] }
 0x2e6   :  { %v469_v58 = vsel %vm186_vm7, %v468_v56, %v467_v57  ;;  %v585_v56 = vld [vmem:[%s2573_s0 + $0x24] sm:$0x1] }
 0x2e7   :  { %1447 = vmatmul.mubr.f32.vlgmr.msra.gmra.mrb[2].mxu1 %v469_v58 }
 0x2e8   :  { %1711 = vmatpush3.bf16.msra.mxu1 %v1942_v5  ;;  %1516 = vmatprep.mubr.msk.f32.mxu1 %vm1913_vm0, %v1914_v4 }
 0x2e9   :  { %1712 = vmatprep.subr.bf16.mxu1 %v1912_v0 }
 0x2ec   :  { %1714 = vmatpush3.bf16.msra.mxu1 %v1951_v7 }
 0x2ed   :  { %1715 = vmatprep.subr.bf16.mxu1 %v1912_v0 }
 0x2f0   :  { %1717 = vmatpush3.bf16.msra.mxu1 %v1963_v10 }
 0x2f1   :  { %1718 = vmatprep.subr.bf16.mxu1 %v1912_v0 }
 0x2f4   :  { %1720 = vmatpush3.bf16.msra.mxu1 %v1975_v13 }
 0x2f5   :  { %1721 = vmatprep.subr.bf16.mxu1 %v1912_v0 }
 0x2f8   :  { %1723 = vmatpush3.bf16.msra.mxu1 %v1987_v16 }
 0x2f9   :  { %1724 = vmatprep.subr.bf16.mxu1 %v1912_v0 }
 0x2fc   :  { %1726 = vmatpush3.bf16.msra.mxu1 %v1999_v19 }
 0x2fd   :  { %1727 = vmatprep.subr.bf16.mxu1 %v1912_v0 }
 0x300   :  { %1729 = vmatpush3.bf16.msra.mxu1 %v2011_v22 }
 0x301   :  { %1730 = vmatprep.subr.bf16.mxu1 %v1912_v0 }
 0x304   :  { %1732 = vmatpush3.bf16.msra.mxu1 %v2023_v25 }
 0x305   :  { %1757 = vmatprep.subr.bf16.mxu1 %v1912_v0 }
 0x3ba   :  { %v537_v1 = vpop.f32.mrb[2].mxu1 }
 0x3bb   :  { %v542_v2 = vrot.slane %v537_v1, 1  ;;  %v543_v3 = vrot.slane %v537_v1, 2  ;;  %v544_v6 = vrot.slane %v537_v1, 3  ;;  %v545_v8 = vrot.slane %v537_v1, 4  ;;  %v1448_v9 = vpop.f32.mrb[3].mxu1 }
 0x3bc   :  { %v546_v12 = vrot.slane %v537_v1, 5  ;;  %v547_v14 = vrot.slane %v537_v1, 6  ;;  %v557_v15 = vadd.f32 %v537_v1, %v440_v59  ;;  %v548_v17 = vrot.slane %v537_v1, 7 }
 0x3bd   :  { %v558_v18 = vadd.f32 %v542_v2, %v441_v60  ;;  %v559_v20 = vadd.f32 %v543_v3, %v442_v61  ;;  %v560_v21 = vadd.f32 %v544_v6, %v443_v62  ;;  %v561_v24 = vadd.f32 %v545_v8, %v444_v63  ;;  %v586_v63 = vld [vmem:[%s2573_s0 + $0x2c] sm:$0x1] }
 0x3be   :  { %1832 = vtanh.f32 %v557_v15  ;;  %v562_v27 = vadd.f32 %v546_v12, %v445_v11  ;;  %v563_v28 = vadd.f32 %v547_v14, %v446_v23  ;;  %v564_v29 = vadd.f32 %v548_v17, %v447_v26  ;;  %v587_v12 = vld [vmem:[%s2573_s0 + $0x34] sm:$0x1]  ;;  %v588_v15 = vld [vmem:[%s2573_s0 + $0x3c] sm:$0x1] }
 0x3bf   :  { %1834 = vtanh.f32 %v558_v18 }
 0x3c0   :  { %1836 = vtanh.f32 %v559_v20 }
 0x3c1   :  { %1838 = vtanh.f32 %v560_v21 }
 0x3c2   :  { %1840 = vtanh.f32 %v561_v24 }
 0x3c3   :  { %1842 = vtanh.f32 %v562_v27 }
 0x3c4   :  { %1844 = vtanh.f32 %v563_v28 }
 0x3c5   :  { %1846 = vtanh.f32 %v564_v29 }
 0x3c8   :  { %v1833_v30 = vpop.eup %1832 }
 0x3c9   :  { %v1835_v31 = vpop.eup %1834  ;;  %573 = vst [vmem:[%s2574_s2 + $0x3] sm:$0x1] %v1833_v30 }
 0x3ca   :  { %v1837_v32 = vpop.eup %1836  ;;  %574 = vst [vmem:[%s2574_s2 + $0xb] sm:$0x1] %v1835_v31  ;;  %v597_v33 = vrot.slane %v1835_v31, 7 }
 0x3cb   :  { %v1839_v34 = vpop.eup %1838  ;;  %575 = vst [vmem:[%s2574_s2 + $0x13] sm:$0x1] %v1837_v32  ;;  %v599_v35 = vrot.slane %v1837_v32, 6 }
 0x3cc   :  { %v1841_v36 = vpop.eup %1840  ;;  %576 = vst [vmem:[%s2574_s2 + $0x1b] sm:$0x1] %v1839_v34  ;;  %v598_v37 = vsel %vm168_vm1, %v597_v33, %v1833_v30  ;;  %v601_v38 = vrot.slane %v1839_v34, 5 }
 0x3cd   :  { %v1843_v39 = vpop.eup %1842  ;;  %577 = vst [vmem:[%s2574_s2 + $0x23] sm:$0x1] %v1841_v36  ;;  %v600_v40 = vsel %vm171_vm2, %v599_v35, %v598_v37  ;;  %v603_v41 = vrot.slane %v1841_v36, 4 }
 0x3ce   :  { %v1845_v42 = vpop.eup %1844  ;;  %578 = vst [vmem:[%s2574_s2 + $0x2b] sm:$0x1] %v1843_v39  ;;  %v602_v43 = vsel %vm174_vm3, %v601_v38, %v600_v40  ;;  %v605_v44 = vrot.slane %v1843_v39, 3 }
 0x3cf   :  { %v1847_v45 = vpop.eup %1846  ;;  %579 = vst [vmem:[%s2574_s2 + $0x33] sm:$0x1] %v1845_v42  ;;  %v604_v46 = vsel %vm177_vm4, %v603_v41, %v602_v43  ;;  %v607_v47 = vrot.slane %v1845_v42, 2 }
 0x3d0   :  { %580 = vst [vmem:[%s2574_s2 + $0x3b] sm:$0x1] %v1847_v45  ;;  %v606_v48 = vsel %vm180_vm5, %v605_v44, %v604_v46  ;;  %v609_v49 = vrot.slane %v1847_v45, 1  ;;  %v727_v46 = vld [vmem:[%s2573_s0 + $0x2d] sm:$0x1] }
 0x3d1   :  { %v608_v50 = vsel %vm183_vm6, %v607_v47, %v606_v48 }
 0x3d2   :  { %v610_v51 = vsel %vm186_vm7, %v609_v49, %v608_v50 }
 0x3d3   :  { %1482 = vmatmul.mubr.f32.vlgmr.msra.gmra.mrb[4].mxu0 %v610_v51 }
 0x3d4   :  { %1735 = vmatpush3.bf16.msra.mxu0 %v1942_v5  ;;  %1551 = vmatprep.mubr.msk.f32.mxu0 %vm1913_vm0, %v1914_v4 }
 0x3d5   :  { %1736 = vmatprep.subr.bf16.mxu0 %v1912_v0 }
 0x3d8   :  { %1738 = vmatpush3.bf16.msra.mxu0 %v1951_v7 }
 0x3d9   :  { %1739 = vmatprep.subr.bf16.mxu0 %v1912_v0 }
 0x3dc   :  { %1741 = vmatpush3.bf16.msra.mxu0 %v1963_v10 }
 0x3dd   :  { %1742 = vmatprep.subr.bf16.mxu0 %v1912_v0 }
 0x3e0   :  { %1744 = vmatpush3.bf16.msra.mxu0 %v1975_v13 }
 0x3e1   :  { %1745 = vmatprep.subr.bf16.mxu0 %v1912_v0 }
 0x3e4   :  { %1747 = vmatpush3.bf16.msra.mxu0 %v1987_v16 }
 0x3e5   :  { %1748 = vmatprep.subr.bf16.mxu0 %v1912_v0 }
 0x3e8   :  { %1750 = vmatpush3.bf16.msra.mxu0 %v1999_v19 }
 0x3e9   :  { %1751 = vmatprep.subr.bf16.mxu0 %v1912_v0 }
 0x3ec   :  { %1753 = vmatpush3.bf16.msra.mxu0 %v2011_v22 }
 0x3ed   :  { %1754 = vmatprep.subr.bf16.mxu0 %v1912_v0 }
 0x3f0   :  { %1756 = vmatpush3.bf16.msra.mxu0 %v2023_v25 }
 0x4a6   :  { %v678_v57 = vpop.f32.mrb[4].mxu0 }
 0x4a7   :  { %v683_v58 = vrot.slane %v678_v57, 1  ;;  %v684_v59 = vrot.slane %v678_v57, 2  ;;  %v685_v60 = vrot.slane %v678_v57, 3  ;;  %v686_v61 = vrot.slane %v678_v57, 4  ;;  %v1483_v62 = vpop.f32.mrb[5].mxu0 }
 0x4a8   :  { %v687_v1 = vrot.slane %v678_v57, 5  ;;  %v688_v2 = vrot.slane %v678_v57, 6  ;;  %v698_v3 = vadd.f32 %v678_v57, %v581_v52  ;;  %v689_v6 = vrot.slane %v678_v57, 7 }
 0x4a9   :  { %v699_v8 = vadd.f32 %v683_v58, %v582_v53  ;;  %v700_v9 = vadd.f32 %v684_v59, %v583_v54  ;;  %v701_v11 = vadd.f32 %v685_v60, %v584_v55  ;;  %v702_v14 = vadd.f32 %v686_v61, %v585_v56  ;;  %v728_v54 = vld [vmem:[%s2573_s0 + $0x35] sm:$0x1]  ;;  %v729_v56 = vld [vmem:[%s2573_s0 + $0x3d] sm:$0x1] }
 0x4aa   :  { %1848 = vtanh.f32 %v698_v3  ;;  %v703_v17 = vadd.f32 %v687_v1, %v586_v63  ;;  %v704_v18 = vadd.f32 %v688_v2, %v587_v12  ;;  %v705_v20 = vadd.f32 %v689_v6, %v588_v15 }
 0x4ab   :  { %1850 = vtanh.f32 %v699_v8 }
 0x4ac   :  { %1852 = vtanh.f32 %v700_v9 }
 0x4ad   :  { %1854 = vtanh.f32 %v701_v11 }
 0x4ae   :  { %1856 = vtanh.f32 %v702_v14 }
 0x4af   :  { %1858 = vtanh.f32 %v703_v17 }
 0x4b0   :  { %1860 = vtanh.f32 %v704_v18 }
 0x4b1   :  { %1862 = vtanh.f32 %v705_v20 }
 0x4b4   :  { %v1849_v21 = vpop.eup %1848 }
 0x4b5   :  { %v1851_v23 = vpop.eup %1850  ;;  %714 = vst [vmem:[%s2574_s2 + $0x4] sm:$0x1] %v1849_v21 }
 0x4b6   :  { %v1853_v24 = vpop.eup %1852  ;;  %715 = vst [vmem:[%s2574_s2 + $0xc] sm:$0x1] %v1851_v23  ;;  %v738_v26 = vrot.slane %v1851_v23, 7 }
 0x4b7   :  { %v1855_v27 = vpop.eup %1854  ;;  %716 = vst [vmem:[%s2574_s2 + $0x14] sm:$0x1] %v1853_v24  ;;  %v740_v28 = vrot.slane %v1853_v24, 6 }
 0x4b8   :  { %v1857_v29 = vpop.eup %1856  ;;  %717 = vst [vmem:[%s2574_s2 + $0x1c] sm:$0x1] %v1855_v27  ;;  %v739_v30 = vsel %vm168_vm1, %v738_v26, %v1849_v21  ;;  %v742_v31 = vrot.slane %v1855_v27, 5 }
 0x4b9   :  { %v1859_v32 = vpop.eup %1858  ;;  %718 = vst [vmem:[%s2574_s2 + $0x24] sm:$0x1] %v1857_v29  ;;  %v741_v33 = vsel %vm171_vm2, %v740_v28, %v739_v30  ;;  %v744_v34 = vrot.slane %v1857_v29, 4  ;;  %v863_v28 = vld [vmem:[%s2573_s0 + $0x6] sm:$0x1] }
 0x4ba   :  { %v1861_v35 = vpop.eup %1860  ;;  %719 = vst [vmem:[%s2574_s2 + $0x2c] sm:$0x1] %v1859_v32  ;;  %v743_v36 = vsel %vm174_vm3, %v742_v31, %v741_v33  ;;  %v746_v37 = vrot.slane %v1859_v32, 3  ;;  %v864_v29 = vld [vmem:[%s2573_s0 + $0xe] sm:$0x1] }
 0x4bb   :  { %v1863_v38 = vpop.eup %1862  ;;  %720 = vst [vmem:[%s2574_s2 + $0x34] sm:$0x1] %v1861_v35  ;;  %v745_v39 = vsel %vm177_vm4, %v744_v34, %v743_v36  ;;  %v748_v40 = vrot.slane %v1861_v35, 2  ;;  %v865_v30 = vld [vmem:[%s2573_s0 + $0x16] sm:$0x1] }
 0x4bc   :  { %721 = vst [vmem:[%s2574_s2 + $0x3c] sm:$0x1] %v1863_v38  ;;  %v747_v41 = vsel %vm180_vm5, %v746_v37, %v745_v39  ;;  %v750_v42 = vrot.slane %v1863_v38, 1  ;;  %v866_v31 = vld [vmem:[%s2573_s0 + $0x1e] sm:$0x1] }
 0x4bd   :  { %v749_v43 = vsel %vm183_vm6, %v748_v40, %v747_v41  ;;  %v867_v32 = vld [vmem:[%s2573_s0 + $0x26] sm:$0x1]  ;;  %v868_v39 = vld [vmem:[%s2573_s0 + $0x2e] sm:$0x1] }
 0x4be   :  { %v751_v44 = vsel %vm186_vm7, %v750_v42, %v749_v43 }
 0x4bf   :  { %1517 = vmatmul.mubr.f32.vlgmr.msra.gmra.mrb[4].mxu1 %v751_v44 }
 0x4c0   :  { %1759 = vmatpush3.bf16.msra.mxu1 %v1942_v5  ;;  %1586 = vmatprep.mubr.msk.f32.mxu1 %vm1913_vm0, %v1914_v4  ;;  %v722_v4 = vld [vmem:[%s2573_s0 + $0x5] sm:$0x1]  ;;  %v723_v5 = vld [vmem:[%s2573_s0 + $0xd] sm:$0x1] }
 0x4c1   :  { %1760 = vmatprep.subr.bf16.mxu1 %v1912_v0 }
 0x4c4   :  { %1762 = vmatpush3.bf16.msra.mxu1 %v1951_v7  ;;  %v724_v7 = vld [vmem:[%s2573_s0 + $0x15] sm:$0x1] }
 0x4c5   :  { %1763 = vmatprep.subr.bf16.mxu1 %v1912_v0 }
 0x4c8   :  { %1765 = vmatpush3.bf16.msra.mxu1 %v1963_v10  ;;  %v725_v10 = vld [vmem:[%s2573_s0 + $0x1d] sm:$0x1] }
 0x4c9   :  { %1766 = vmatprep.subr.bf16.mxu1 %v1912_v0 }
 0x4cc   :  { %1768 = vmatpush3.bf16.msra.mxu1 %v1975_v13 }
 0x4cd   :  { %1769 = vmatprep.subr.bf16.mxu1 %v1912_v0 }
 0x4d0   :  { %1771 = vmatpush3.bf16.msra.mxu1 %v1987_v16 }
 0x4d1   :  { %1772 = vmatprep.subr.bf16.mxu1 %v1912_v0 }
 0x4d4   :  { %1774 = vmatpush3.bf16.msra.mxu1 %v1999_v19 }
 0x4d5   :  { %1775 = vmatprep.subr.bf16.mxu1 %v1912_v0 }
 0x4d8   :  { %1777 = vmatpush3.bf16.msra.mxu1 %v2011_v22 }
 0x4d9   :  { %1778 = vmatprep.subr.bf16.mxu1 %v1912_v0  ;;  %v726_v0 = vld [vmem:[%s2573_s0 + $0x25] sm:$0x1] }
 0x4dc   :  { %1780 = vmatpush3.bf16.msra.mxu1 %v2023_v25 }
 0x592   :  { %v819_v13 = vpop.f32.mrb[4].mxu1 }
 0x593   :  { %v824_v16 = vrot.slane %v819_v13, 1  ;;  %v825_v19 = vrot.slane %v819_v13, 2  ;;  %v826_v22 = vrot.slane %v819_v13, 3  ;;  %v827_v25 = vrot.slane %v819_v13, 4  ;;  %v1518_v45 = vpop.f32.mrb[5].mxu1 }
 0x594   :  { %v828_v47 = vrot.slane %v819_v13, 5  ;;  %v829_v48 = vrot.slane %v819_v13, 6  ;;  %v839_v49 = vadd.f32 %v819_v13, %v722_v4  ;;  %v830_v50 = vrot.slane %v819_v13, 7 }
 0x595   :  { %v840_v51 = vadd.f32 %v824_v16, %v723_v5  ;;  %v841_v52 = vadd.f32 %v825_v19, %v724_v7  ;;  %v842_v53 = vadd.f32 %v826_v22, %v725_v10  ;;  %v843_v55 = vadd.f32 %v827_v25, %v726_v0  ;;  %v869_v7 = vld [vmem:[%s2573_s0 + $0x36] sm:$0x1]  ;;  %v870_v0 = vld [vmem:[%s2573_s0 + $0x3e] sm:$0x1] }
 0x596   :  { %1864 = vtanh.f32 %v839_v49  ;;  %v844_v57 = vadd.f32 %v828_v47, %v727_v46  ;;  %v845_v58 = vadd.f32 %v829_v48, %v728_v54  ;;  %v846_v59 = vadd.f32 %v830_v50, %v729_v56 }
 0x597   :  { %1866 = vtanh.f32 %v840_v51 }
 0x598   :  { %1868 = vtanh.f32 %v841_v52 }
 0x599   :  { %1870 = vtanh.f32 %v842_v53 }
 0x59a   :  { %1872 = vtanh.f32 %v843_v55 }
 0x59b   :  { %1874 = vtanh.f32 %v844_v57 }
 0x59c   :  { %1876 = vtanh.f32 %v845_v58 }
 0x59d   :  { %1878 = vtanh.f32 %v846_v59 }
 0x5a0   :  { %v1865_v60 = vpop.eup %1864 }
 0x5a1   :  { %v1867_v61 = vpop.eup %1866  ;;  %855 = vst [vmem:[%s2574_s2 + $0x5] sm:$0x1] %v1865_v60 }
 0x5a2   :  { %v1869_v62 = vpop.eup %1868  ;;  %856 = vst [vmem:[%s2574_s2 + $0xd] sm:$0x1] %v1867_v61  ;;  %v879_v63 = vrot.slane %v1867_v61, 7 }
 0x5a3   :  { %v1871_v1 = vpop.eup %1870  ;;  %857 = vst [vmem:[%s2574_s2 + $0x15] sm:$0x1] %v1869_v62  ;;  %v881_v2 = vrot.slane %v1869_v62, 6 }
 0x5a4   :  { %v1873_v3 = vpop.eup %1872  ;;  %858 = vst [vmem:[%s2574_s2 + $0x1d] sm:$0x1] %v1871_v1  ;;  %v880_v6 = vsel %vm168_vm1, %v879_v63, %v1865_v60  ;;  %v883_v8 = vrot.slane %v1871_v1, 5 }
 0x5a5   :  { %v1875_v9 = vpop.eup %1874  ;;  %859 = vst [vmem:[%s2574_s2 + $0x25] sm:$0x1] %v1873_v3  ;;  %v882_v11 = vsel %vm171_vm2, %v881_v2, %v880_v6  ;;  %v885_v12 = vrot.slane %v1873_v3, 4  ;;  %v1004_v2 = vld [vmem:[%s2573_s0 + $0x7] sm:$0x1] }
 0x5a6   :  { %v1877_v14 = vpop.eup %1876  ;;  %860 = vst [vmem:[%s2574_s2 + $0x2d] sm:$0x1] %v1875_v9  ;;  %v884_v15 = vsel %vm174_vm3, %v883_v8, %v882_v11  ;;  %v887_v17 = vrot.slane %v1875_v9, 3  ;;  %v1005_v3 = vld [vmem:[%s2573_s0 + $0xf] sm:$0x1] }
 0x5a7   :  { %v1879_v18 = vpop.eup %1878  ;;  %861 = vst [vmem:[%s2574_s2 + $0x35] sm:$0x1] %v1877_v14  ;;  %v886_v20 = vsel %vm177_vm4, %v885_v12, %v884_v15  ;;  %v889_v21 = vrot.slane %v1877_v14, 2  ;;  %v1006_v6 = vld [vmem:[%s2573_s0 + $0x17] sm:$0x1] }
 0x5a8   :  { %862 = vst [vmem:[%s2574_s2 + $0x3d] sm:$0x1] %v1879_v18  ;;  %v888_v23 = vsel %vm180_vm5, %v887_v17, %v886_v20  ;;  %v891_v24 = vrot.slane %v1879_v18, 1  ;;  %v1007_v8 = vld [vmem:[%s2573_s0 + $0x1f] sm:$0x1] }
 0x5a9   :  { %v890_v26 = vsel %vm183_vm6, %v889_v21, %v888_v23  ;;  %v1008_v9 = vld [vmem:[%s2573_s0 + $0x27] sm:$0x1]  ;;  %v1009_v20 = vld [vmem:[%s2573_s0 + $0x2f] sm:$0x1] }
 0x5aa   :  { %v892_v27 = vsel %vm186_vm7, %v891_v24, %v890_v26  ;;  %v1010_v26 = vld [vmem:[%s2573_s0 + $0x37] sm:$0x1] }
 0x5ab   :  { %1552 = vmatmul.mubr.f32.vlgmr.msra.gmra.mrb[6].mxu0 %v892_v27 }
 0x67e   :  { %v960_v33 = vpop.f32.mrb[6].mxu0 }
 0x67f   :  { %v965_v34 = vrot.slane %v960_v33, 1  ;;  %v966_v35 = vrot.slane %v960_v33, 2  ;;  %v967_v36 = vrot.slane %v960_v33, 3  ;;  %v968_v37 = vrot.slane %v960_v33, 4  ;;  %v1553_v38 = vpop.f32.mrb[7].mxu0 }
 0x680   :  { %v969_v40 = vrot.slane %v960_v33, 5  ;;  %v970_v41 = vrot.slane %v960_v33, 6  ;;  %v980_v42 = vadd.f32 %v960_v33, %v863_v28  ;;  %v971_v43 = vrot.slane %v960_v33, 7 }
 0x681   :  { %v981_v44 = vadd.f32 %v965_v34, %v864_v29  ;;  %v982_v4 = vadd.f32 %v966_v35, %v865_v30  ;;  %v983_v5 = vadd.f32 %v967_v36, %v866_v31  ;;  %v984_v10 = vadd.f32 %v968_v37, %v867_v32  ;;  %v1011_v31 = vld [vmem:[%s2573_s0 + $0x3f] sm:$0x1] }
 0x682   :  { %1880 = vtanh.f32 %v980_v42  ;;  %v985_v13 = vadd.f32 %v969_v40, %v868_v39  ;;  %v986_v16 = vadd.f32 %v970_v41, %v869_v7  ;;  %v987_v19 = vadd.f32 %v971_v43, %v870_v0 }
 0x683   :  { %1882 = vtanh.f32 %v981_v44 }
 0x684   :  { %1884 = vtanh.f32 %v982_v4 }
 0x685   :  { %1886 = vtanh.f32 %v983_v5 }
 0x686   :  { %1888 = vtanh.f32 %v984_v10 }
 0x687   :  { %1890 = vtanh.f32 %v985_v13 }
 0x688   :  { %1892 = vtanh.f32 %v986_v16 }
 0x689   :  { %1894 = vtanh.f32 %v987_v19 }
 0x68c   :  { %v1881_v22 = vpop.eup %1880 }
 0x68d   :  { %v1883_v25 = vpop.eup %1882  ;;  %996 = vst [vmem:[%s2574_s2 + $0x6] sm:$0x1] %v1881_v22 }
 0x68e   :  { %v1885_v45 = vpop.eup %1884  ;;  %997 = vst [vmem:[%s2574_s2 + $0xe] sm:$0x1] %v1883_v25  ;;  %v1020_v46 = vrot.slane %v1883_v25, 7 }
 0x68f   :  { %v1887_v47 = vpop.eup %1886  ;;  %998 = vst [vmem:[%s2574_s2 + $0x16] sm:$0x1] %v1885_v45  ;;  %v1022_v48 = vrot.slane %v1885_v45, 6 }
 0x690   :  { %v1889_v49 = vpop.eup %1888  ;;  %999 = vst [vmem:[%s2574_s2 + $0x1e] sm:$0x1] %v1887_v47  ;;  %v1021_v50 = vsel %vm168_vm1, %v1020_v46, %v1881_v22  ;;  %v1024_v51 = vrot.slane %v1887_v47, 5 }
 0x691   :  { %v1891_v52 = vpop.eup %1890  ;;  %1000 = vst [vmem:[%s2574_s2 + $0x26] sm:$0x1] %v1889_v49  ;;  %v1023_v53 = vsel %vm171_vm2, %v1022_v48, %v1021_v50  ;;  %v1026_v54 = vrot.slane %v1889_v49, 4 }
 0x692   :  { %v1893_v55 = vpop.eup %1892  ;;  %1001 = vst [vmem:[%s2574_s2 + $0x2e] sm:$0x1] %v1891_v52  ;;  %v1025_v56 = vsel %vm174_vm3, %v1024_v51, %v1023_v53  ;;  %v1028_v57 = vrot.slane %v1891_v52, 3 }
 0x693   :  { %v1895_v58 = vpop.eup %1894  ;;  %1002 = vst [vmem:[%s2574_s2 + $0x36] sm:$0x1] %v1893_v55  ;;  %v1027_v59 = vsel %vm177_vm4, %v1026_v54, %v1025_v56  ;;  %v1030_v60 = vrot.slane %v1893_v55, 2 }
 0x694   :  { %1003 = vst [vmem:[%s2574_s2 + $0x3e] sm:$0x1] %v1895_v58  ;;  %v1029_v61 = vsel %vm180_vm5, %v1028_v57, %v1027_v59  ;;  %v1032_v62 = vrot.slane %v1895_v58, 1 }
 0x695   :  { %v1031_v63 = vsel %vm183_vm6, %v1030_v60, %v1029_v61 }
 0x696   :  { %v1033_v1 = vsel %vm186_vm7, %v1032_v62, %v1031_v63 }
 0x697   :  { %1587 = vmatmul.mubr.f32.vlgmr.msra.gmra.mrb[6].mxu1 %v1033_v1 }
 0x76a   :  { %v1101_v11 = vpop.f32.mrb[6].mxu1 }
 0x76b   :  { %v1106_v12 = vrot.slane %v1101_v11, 1  ;;  %v1107_v14 = vrot.slane %v1101_v11, 2  ;;  %v1108_v15 = vrot.slane %v1101_v11, 3  ;;  %v1109_v17 = vrot.slane %v1101_v11, 4  ;;  %v1588_v18 = vpop.f32.mrb[7].mxu1 }
 0x76c   :  { %v1110_v21 = vrot.slane %v1101_v11, 5  ;;  %v1111_v23 = vrot.slane %v1101_v11, 6  ;;  %v1121_v24 = vadd.f32 %v1101_v11, %v1004_v2  ;;  %v1112_v27 = vrot.slane %v1101_v11, 7 }
 0x76d   :  { %v1122_v28 = vadd.f32 %v1106_v12, %v1005_v3  ;;  %v1123_v29 = vadd.f32 %v1107_v14, %v1006_v6  ;;  %v1124_v30 = vadd.f32 %v1108_v15, %v1007_v8  ;;  %v1125_v32 = vadd.f32 %v1109_v17, %v1008_v9 }
 0x76e   :  { %1896 = vtanh.f32 %v1121_v24  ;;  %v1126_v33 = vadd.f32 %v1110_v21, %v1009_v20  ;;  %v1127_v34 = vadd.f32 %v1111_v23, %v1010_v26  ;;  %v1128_v35 = vadd.f32 %v1112_v27, %v1011_v31 }
 0x76f   :  { %1898 = vtanh.f32 %v1122_v28 }
 0x770   :  { %1900 = vtanh.f32 %v1123_v29 }
 0x771   :  { %1902 = vtanh.f32 %v1124_v30 }
 0x772   :  { %1904 = vtanh.f32 %v1125_v32 }
 0x773   :  { %1906 = vtanh.f32 %v1126_v33 }
 0x774   :  { %1908 = vtanh.f32 %v1127_v34 }
 0x775   :  { %1910 = vtanh.f32 %v1128_v35 }
 0x778   :  { %v1897_v36 = vpop.eup %1896 }
 0x779   :  { %v1899_v37 = vpop.eup %1898  ;;  %1137 = vst [vmem:[%s2574_s2 + $0x7] sm:$0x1] %v1897_v36 }
 0x77a   :  { %v1901_v38 = vpop.eup %1900  ;;  %1138 = vst [vmem:[%s2574_s2 + $0xf] sm:$0x1] %v1899_v37 }
 0x77b   :  { %v1903_v39 = vpop.eup %1902  ;;  %1139 = vst [vmem:[%s2574_s2 + $0x17] sm:$0x1] %v1901_v38 }
 0x77c   :  { %v1905_v40 = vpop.eup %1904  ;;  %1140 = vst [vmem:[%s2574_s2 + $0x1f] sm:$0x1] %v1903_v39 }
 0x77d   :  { %v1907_v41 = vpop.eup %1906  ;;  %1141 = vst [vmem:[%s2574_s2 + $0x27] sm:$0x1] %v1905_v40 }
 0x77e   :  { %v1909_v42 = vpop.eup %1908  ;;  %1142 = vst [vmem:[%s2574_s2 + $0x2f] sm:$0x1] %v1907_v41 }
 0x77f   :  { %v1911_v43 = vpop.eup %1910  ;;  %1143 = vst [vmem:[%s2574_s2 + $0x37] sm:$0x1] %v1909_v42 }
 0x780   :  { %1144 = vst [vmem:[%s2574_s2 + $0x3f] sm:$0x1] %v1911_v43 }

</bundles_post_ra>
